<compile_context>
chip_gen: v7x
topology: tpu7x:2x2x1
jax: 0.10.0
libtpu: 0.0.40
codegen_flags: <defaults>
</compile_context>

<pallas_src>
import jax
import jax.numpy as jnp
from jax import lax
from jax.experimental import pallas as pl
from jax.experimental.pallas import tpu as pltpu


def _round_up(v, m):
    return (v + m - 1) // m * m


def _normed_linear_kernel(x_ref, w_ref, o_ref, acc_ref, xss_ref, wss_ref):
    """Accumulate x@w plus row/col sum-of-squares over K; normalize in epilogue."""
    k = pl.program_id(2)

    @pl.when(k == 0)
    def _():
        acc_ref[...] = jnp.zeros_like(acc_ref)
        xss_ref[...] = jnp.zeros_like(xss_ref)
        wss_ref[...] = jnp.zeros_like(wss_ref)

    x = x_ref[...]  # (tm, tk) native dtype -> straight to the MXU
    w = w_ref[...]  # (tk, tn)

    acc_ref[...] += jnp.dot(x, w, preferred_element_type=jnp.float32)

    # --- norm accumulation (f32, hot loop kept VPU-only) --------------------
    xf = x.astype(jnp.float32)
    wf = w.astype(jnp.float32)
    xsq = xf * xf                       # (tm, tk)
    wsq = wf * wf                       # (tk, tn)

    # Row sumsq of x: fold 128-lane groups with plain vreg adds (no per-step
    # cross-lane XLU reduce); the final (tm,128)->(tm,1) reduce happens once
    # in the epilogue.
    tk_blk = xsq.shape[1]
    partial = xsq[:, 0:128]
    for c in range(1, tk_blk // 128):   # static, lane-aligned slices
        partial = partial + xsq[:, c * 128:(c + 1) * 128]
    xss_ref[...] += partial             # (tm, 128)

    # Col sumsq of w: sublane reduction -> mostly vreg-row adds, tiny tail.
    wss_ref[...] += jnp.sum(wsq, axis=0, keepdims=True)   # (1, tn)

    @pl.when(k == pl.num_programs(2) - 1)
    def _():
        # max(||v||, 1e-12) == sqrt(max(sumsq, 1e-24)); clamp BEFORE rsqrt so
        # zero rows/cols (incl. padding) stay finite.  rsqrt -> EUP slot.
        eps_sq = jnp.float32(1e-24)
        xss_row = jnp.sum(xss_ref[...], axis=1, keepdims=True)      # (tm, 1)
        inv_x = jnp.float32(10.0) * lax.rsqrt(jnp.maximum(xss_row, eps_sq))
        inv_w = lax.rsqrt(jnp.maximum(wss_ref[...], eps_sq))        # (1, tn)
        o_ref[...] = (acc_ref[...] * inv_x * inv_w).astype(o_ref.dtype)


def normed_linear(x, weight, *, tm=None, tn=None, tk=None):
    """x: [N, in_features], weight: [in_features, out_features] -> [N, out_features]."""
    N, K = x.shape
    K2, M = weight.shape
    assert K == K2, f"in_features mismatch: {K} vs {K2}"
    out_dtype = x.dtype

    # Lane-dense, MXU-friendly tile defaults, clamped to the (padded) problem.
    # Conservative for v7x's 32 MiB scoped VMEM; multiples of 128 keep the MXU
    # packed and output stores unmasked.
    if tm is None:
        tm = min(256, _round_up(N, 8))
    if tn is None:
        tn = min(256, _round_up(M, 128))
    if tk is None:
        tk = min(512, _round_up(K, 128))

    Np, Kp, Mp = _round_up(N, tm), _round_up(K, tk), _round_up(M, tn)

    # Advisory cost (un-padded problem).
    bytes_accessed = (
        N * K * x.dtype.itemsize
        + K * M * weight.dtype.itemsize
        + N * M * jnp.dtype(out_dtype).itemsize
    )
    cost = pl.CostEstimate(
        flops=2 * N * K * M,
        transcendentals=N + M,
        bytes_accessed=bytes_accessed,
    )

    # Zero-pad to tile multiples (exact: padded rows/cols produce zeros and are
    # sliced off; padded K contributes nothing to matmul or sum-of-squares).
    if (Np, Kp) != (N, K):
        x = jnp.pad(x, ((0, Np - N), (0, Kp - K)))
    if (Kp, Mp) != (K, M):
        weight = jnp.pad(weight, ((0, Kp - K), (0, Mp - M)))

    grid = (Np // tm, Mp // tn, Kp // tk)

    out = pl.pallas_call(
        _normed_linear_kernel,
        out_shape=jax.ShapeDtypeStruct((Np, Mp), out_dtype),
        grid_spec=pltpu.PrefetchScalarGridSpec(
            num_scalar_prefetch=0,
            grid=grid,
            in_specs=[
                pl.BlockSpec((tm, tk), lambda i, j, k: (i, k)),
                pl.BlockSpec((tk, tn), lambda i, j, k: (k, j)),
            ],
            out_specs=pl.BlockSpec((tm, tn), lambda i, j, k: (i, j)),
            scratch_shapes=[
                pltpu.VMEM((tm, tn), jnp.float32),   # matmul accumulator
                pltpu.VMEM((tm, 128), jnp.float32),  # lane-group partial row sumsq of x
                pltpu.VMEM((1, tn), jnp.float32),    # col sumsq of w
            ],
        ),
        compiler_params=pltpu.CompilerParams(
            dimension_semantics=("parallel", "parallel", "arbitrary"),
            vmem_limit_bytes=32 * 1024 * 1024,
        ),
        cost_estimate=cost,
    )(x, weight)

    if (Np, Mp) != (N, M):
        out = out[:N, :M]
    return out
    # TODO(synk): for inference with a static weight, precompute the per-column
    # inverse norms once outside the kernel and pass them as a [1, M] input to
    # drop the (small, VPU-only) per-tile wss accumulation entirely.


def init_normed_linear_weight(key, in_features, out_features):
    """Reproduces: weight.uniform_(-1, 1).renorm_(2, 1, 1e-5).mul_(1e5).

    renorm_(2, 1, maxnorm): each slice along dim 1 (each column) is rescaled so
    its L2 norm is at most maxnorm; then multiplied by 1e5.
    """
    w = jax.random.uniform(
        key, (in_features, out_features), dtype=jnp.float32, minval=-1.0, maxval=1.0
    )
    maxnorm = 1e-5
    col_norm = jnp.sqrt(jnp.sum(w * w, axis=0, keepdims=True))
    scale = jnp.where(col_norm > maxnorm, maxnorm / (col_norm + 1e-7), 1.0)
    return (w * scale) * 1e5


def normed_linear_ref(x, weight):
    """Pure-JAX reference for correctness checking."""
    eps = 1e-12
    x_n = x / jnp.maximum(jnp.linalg.norm(x, axis=1, keepdims=True), eps)
    w_n = weight / jnp.maximum(jnp.linalg.norm(weight, axis=0, keepdims=True), eps)
    return 10.0 * (x_n @ w_n)


if __name__ == "__main__":
    key = jax.random.PRNGKey(0)
    k_x, k_w = jax.random.split(key)

    batch = 8
    in_features = 32
    out_features = 16

    x = jax.random.normal(k_x, (batch, in_features), dtype=jnp.float32)
    weight = init_normed_linear_weight(k_w, in_features, out_features)

    out = normed_linear(x, weight)
    out = jax.block_until_ready(out)

    ref = normed_linear_ref(x, weight)
    assert out.shape == (batch, out_features)
    assert jnp.allclose(out, ref, atol=1e-4, rtol=1e-4), "mismatch vs reference"

    print("KERNEL_OK")
</pallas_src>

<mosaic_0001>
module attributes {stable_mosaic.version = 11 : i64} {
  func.func @_normed_linear_kernel(%arg0: i32, %arg1: i32, %arg2: i32, %arg3: memref<8x128xf32, #tpu.memory_space<vmem>>, %arg4: memref<128x128xf32, #tpu.memory_space<vmem>>, %arg5: memref<8x128xf32, #tpu.memory_space<vmem>>, %arg6: memref<8x128xf32, #tpu.memory_space<vmem>>, %arg7: memref<8x128xf32, #tpu.memory_space<vmem>>, %arg8: memref<1x128xf32, #tpu.memory_space<vmem>>) attributes {dimension_semantics = [#tpu.dimension_semantics<parallel>, #tpu.dimension_semantics<parallel>, #tpu.dimension_semantics<arbitrary>], iteration_bounds = array<i64: 1, 1, 1>, scalar_prefetch = 0 : i64, scratch_operands = 3 : i64, tpu.core_type = #tpu.core_type<tc>, window_params = [{transform_indices = @transform_0, window_bounds = array<i64: 8, 128>}, {transform_indices = @transform_1, window_bounds = array<i64: 128, 128>}, {transform_indices = @transform_2, window_bounds = array<i64: 8, 128>}]} {
    %c0_i32 = arith.constant 0 : i32
    %0 = arith.cmpi eq, %arg2, %c0_i32 : i32
    %1 = arith.extui %0 : i1 to i32
    %c0_i32_0 = arith.constant 0 : i32
    %2 = arith.cmpi ne, %1, %c0_i32_0 : i32
    scf.if %2 {
      %cst_19 = arith.constant 0.000000e+00 : f32
      %22 = vector.broadcast %cst_19 : f32 to vector<8x128xf32>
      %c0_20 = arith.constant 0 : index
      %c0_21 = arith.constant 0 : index
      %23 = vector.load %arg6[%c0_20, %c0_21] : memref<8x128xf32, #tpu.memory_space<vmem>>, vector<8x128xf32>
      tpu.vector_store %arg6[%c0_20, %c0_21], %22 {strides = array<i32>} : memref<8x128xf32, #tpu.memory_space<vmem>>, vector<8x128xf32>,
      %cst_22 = arith.constant 0.000000e+00 : f32
      %24 = vector.broadcast %cst_22 : f32 to vector<8x128xf32>
      %c0_23 = arith.constant 0 : index
      %c0_24 = arith.constant 0 : index
      %25 = vector.load %arg7[%c0_23, %c0_24] : memref<8x128xf32, #tpu.memory_space<vmem>>, vector<8x128xf32>
      tpu.vector_store %arg7[%c0_23, %c0_24], %24 {strides = array<i32>} : memref<8x128xf32, #tpu.memory_space<vmem>>, vector<8x128xf32>,
      %cst_25 = arith.constant 0.000000e+00 : f32
      %26 = vector.broadcast %cst_25 : f32 to vector<1x128xf32>
      %c0_26 = arith.constant 0 : index
      %c0_27 = arith.constant 0 : index
      %27 = vector.load %arg8[%c0_26, %c0_27] : memref<1x128xf32, #tpu.memory_space<vmem>>, vector<1x128xf32>
      tpu.vector_store %arg8[%c0_26, %c0_27], %26 {strides = array<i32>} : memref<1x128xf32, #tpu.memory_space<vmem>>, vector<1x128xf32>,
    } else {
    }
    %c0 = arith.constant 0 : index
    %c0_1 = arith.constant 0 : index
    %3 = vector.load %arg3[%c0, %c0_1] : memref<8x128xf32, #tpu.memory_space<vmem>>, vector<8x128xf32>
    %c0_2 = arith.constant 0 : index
    %c0_3 = arith.constant 0 : index
    %4 = vector.load %arg4[%c0_2, %c0_3] : memref<128x128xf32, #tpu.memory_space<vmem>>, vector<128x128xf32>
    %c0_4 = arith.constant 0 : index
    %c0_5 = arith.constant 0 : index
    %5 = vector.load %arg6[%c0_4, %c0_5] : memref<8x128xf32, #tpu.memory_space<vmem>>, vector<8x128xf32>
    %cst = arith.constant dense<0.000000e+00> : vector<8x128xf32>
    %6 = tpu.matmul %3, %4, %cst {dimension_numbers = #tpu.dot_dimension_numbers<[1], [0], [0], [1], [0, 0, 1, 1], [], []>} : vector<8x128xf32>, vector<128x128xf32>, vector<8x128xf32> -> vector<8x128xf32>
    %7 = arith.addf %5, %6 : vector<8x128xf32>
    %c0_6 = arith.constant 0 : index
    %c0_7 = arith.constant 0 : index
    %8 = vector.load %arg6[%c0_6, %c0_7] : memref<8x128xf32, #tpu.memory_space<vmem>>, vector<8x128xf32>
    tpu.vector_store %arg6[%c0_6, %c0_7], %7 {strides = array<i32>} : memref<8x128xf32, #tpu.memory_space<vmem>>, vector<8x128xf32>,
    %9 = arith.mulf %3, %3 : vector<8x128xf32>
    %10 = arith.mulf %4, %4 : vector<128x128xf32>
    %c0_8 = arith.constant 0 : index
    %c0_9 = arith.constant 0 : index
    %11 = vector.load %arg7[%c0_8, %c0_9] : memref<8x128xf32, #tpu.memory_space<vmem>>, vector<8x128xf32>
    %12 = arith.addf %11, %9 : vector<8x128xf32>
    %c0_10 = arith.constant 0 : index
    %c0_11 = arith.constant 0 : index
    %13 = vector.load %arg7[%c0_10, %c0_11] : memref<8x128xf32, #tpu.memory_space<vmem>>, vector<8x128xf32>
    tpu.vector_store %arg7[%c0_10, %c0_11], %12 {strides = array<i32>} : memref<8x128xf32, #tpu.memory_space<vmem>>, vector<8x128xf32>,
    %c0_12 = arith.constant 0 : index
    %c0_13 = arith.constant 0 : index
    %14 = vector.load %arg8[%c0_12, %c0_13] : memref<1x128xf32, #tpu.memory_space<vmem>>, vector<1x128xf32>
    %cst_14 = arith.constant dense<0.000000e+00> : vector<128xf32>
    %15 = vector.multi_reduction <add>, %10, %cst_14 [0] : vector<128x128xf32> to vector<128xf32>
    %16 = vector.shape_cast %15 : vector<128xf32> to vector<1x128xf32>
    %17 = arith.addf %14, %16 : vector<1x128xf32>
    %c0_15 = arith.constant 0 : index
    %c0_16 = arith.constant 0 : index
    %18 = vector.load %arg8[%c0_15, %c0_16] : memref<1x128xf32, #tpu.memory_space<vmem>>, vector<1x128xf32>
    tpu.vector_store %arg8[%c0_15, %c0_16], %17 {strides = array<i32>} : memref<1x128xf32, #tpu.memory_space<vmem>>, vector<1x128xf32>,
    %c0_i32_17 = arith.constant 0 : i32
    %19 = arith.cmpi eq, %arg2, %c0_i32_17 : i32
    %20 = arith.extui %19 : i1 to i32
    %c0_i32_18 = arith.constant 0 : i32
    %21 = arith.cmpi ne, %20, %c0_i32_18 : i32
    scf.if %21 {
      %c0_19 = arith.constant 0 : index
      %c0_20 = arith.constant 0 : index
      %22 = vector.load %arg7[%c0_19, %c0_20] : memref<8x128xf32, #tpu.memory_space<vmem>>, vector<8x128xf32>
      %cst_21 = arith.constant dense<0.000000e+00> : vector<8xf32>
      %23 = vector.multi_reduction <add>, %22, %cst_21 [1] : vector<8x128xf32> to vector<8xf32>
      %24 = vector.shape_cast %23 : vector<8xf32> to vector<8x1xf32>
      %cst_22 = arith.constant 1.000000e-24 : f32
      %25 = vector.broadcast %cst_22 : f32 to vector<8x1xf32>
      %26 = arith.maximumf %24, %25 : vector<8x1xf32>
      %27 = math.rsqrt %26 : vector<8x1xf32>
      %cst_23 = arith.constant 1.000000e+01 : f32
      %28 = vector.broadcast %cst_23 : f32 to vector<8x1xf32>
      %29 = arith.mulf %28, %27 : vector<8x1xf32>
      %c0_24 = arith.constant 0 : index
      %c0_25 = arith.constant 0 : index
      %30 = vector.load %arg8[%c0_24, %c0_25] : memref<1x128xf32, #tpu.memory_space<vmem>>, vector<1x128xf32>
      %cst_26 = arith.constant 1.000000e-24 : f32
      %31 = vector.broadcast %cst_26 : f32 to vector<1x128xf32>
      %32 = arith.maximumf %30, %31 : vector<1x128xf32>
      %33 = math.rsqrt %32 : vector<1x128xf32>
      %c0_27 = arith.constant 0 : index
      %c0_28 = arith.constant 0 : index
      %34 = vector.load %arg6[%c0_27, %c0_28] : memref<8x128xf32, #tpu.memory_space<vmem>>, vector<8x128xf32>
      %35 = vector.broadcast %29 : vector<8x1xf32> to vector<8x128xf32>
      %36 = arith.mulf %34, %35 : vector<8x128xf32>
      %37 = vector.broadcast %33 : vector<1x128xf32> to vector<8x128xf32>
      %38 = arith.mulf %36, %37 : vector<8x128xf32>
      %c0_29 = arith.constant 0 : index
      %c0_30 = arith.constant 0 : index
      %39 = vector.load %arg5[%c0_29, %c0_30] : memref<8x128xf32, #tpu.memory_space<vmem>>, vector<8x128xf32>
      tpu.vector_store %arg5[%c0_29, %c0_30], %38 {strides = array<i32>} : memref<8x128xf32, #tpu.memory_space<vmem>>, vector<8x128xf32>,
    } else {
    }
    return
  }
  func.func @transform_0(%arg0: i32, %arg1: i32, %arg2: i32) -> (i32, i32) {
    %c0_i32 = arith.constant 0 : i32
    return %arg0, %arg2 : i32, i32
  }
  func.func @transform_1(%arg0: i32, %arg1: i32, %arg2: i32) -> (i32, i32) {
    %c0_i32 = arith.constant 0 : i32
    return %arg2, %arg1 : i32, i32
  }
  func.func @transform_2(%arg0: i32, %arg1: i32, %arg2: i32) -> (i32, i32) {
    %c0_i32 = arith.constant 0 : i32
    return %arg0, %arg1 : i32, i32
  }
}

</mosaic_0001>

<bundles_post_ra>
// kernel: tpu_custom_call.1
= control target key start
LH: loop header
LB: loop body
LE: loop exit
PB: predicated region body
PF: predicated region fallthrough
CT: control target
= control target key end

     0   :  { %7 = vsyncpa [#allocation6], 0  ;;  %s451_s0 = inlined_call_operand.hbm [shape: f32[8,128], index: 0, kind: input, shape index: {}]   ;;  %s452_s1 = inlined_call_operand.hbm [shape: f32[128,128], index: 1, kind: input, shape index: {}]   ;;  %s453_s2 = inlined_call_operand.hbm [shape: f32[8,128], index: 2, kind: output, shape index: {}]  }
   0x1   :  { %8 = vsyncpa [#allocation9], 0 }
   0x2   :  { %9 = vsyncpa [#allocation7], 0  ;;  %s377_s9 = smov [#allocation5]   ;;  %s378_s11 = smov [#allocation8]  }
   0x3   :  { %s16_s10 = sshll.u32 %s377_s9, 4  ;;  %s25_s12 = sshll.u32 %s378_s11, 4  ;;  %s17_s10 = int_to_ptr.vmem [resolvable:$true] %s16_s10  ;;  %s400_s12 = int_to_ptr.vmem [resolvable:$true] %s25_s12 }
   0x4   :  { %s305_s15 = scalar_lea.hbm %s451_s0, 128 }
   0x5   :  { %p306_p0 = scmp.ne.s32.totalorder %s451_s0, %s305_s15  ;;  %p309_p1 = scmp.lt.u32.totalorder %s305_s15, %s451_s0 }
   0x7   :  { %p311_p2 = pnand %p309_p1, %p306_p0 }
   0x9   :  { %314 = shalt.err (!%p311_p2)
}
   0xa   :  { %s315_s20 = scalar_lea.vmem %s17_s10, 128  ;;  %p320_p4 = scmp.lt.s32.totalorder %s17_s10, %s17_s10 }
   0xb   :  { %p316_p3 = scmp.ne.s32.totalorder %s17_s10, %s315_s20  ;;  %p321_p5 = scmp.lt.s32.totalorder %s315_s20, %s315_s20 }
   0xd   :  { %p322_p6 = por %p321_p5, %p320_p4 }
   0xf   :  { %p323_p7 = pnand %p322_p6, %p316_p3 }
  0x11   :  { %326 = shalt.err (!%p323_p7)
}
  0x12   :  { %19 = dma.hbm_to_vmem [thread:$0]  %s451_s0, 128, %s17_s10, [#allocation6]  }
  0x13   :  { %s327_s25 = scalar_lea.hbm %s452_s1, 2048 }
  0x14   :  { %p328_p8 = scmp.ne.s32.totalorder %s452_s1, %s327_s25  ;;  %p331_p9 = scmp.lt.u32.totalorder %s327_s25, %s452_s1 }
  0x16   :  { %p333_p10 = pnand %p331_p9, %p328_p8 }
  0x18   :  { %336 = shalt.err (!%p333_p10)
}
  0x19   :  { %s337_s30 = scalar_lea.vmem %s400_s12, 2048  ;;  %p342_p12 = scmp.lt.s32.totalorder %s400_s12, %s400_s12 }
  0x1a   :  { %p338_p11 = scmp.ne.s32.totalorder %s400_s12, %s337_s30  ;;  %p343_p13 = scmp.lt.s32.totalorder %s337_s30, %s337_s30 }
  0x1c   :  { %p344_p0 = por %p343_p13, %p342_p12 }
  0x1e   :  { %p345_p1 = pnand %p344_p0, %p338_p11 }
  0x20   :  { %348 = shalt.err (!%p345_p1)
}
  0x21   :  { %s379_s0 = smov 128   ;;  %s380_s3 = smov 8  }
  0x22   :  { %31 = dma.hbm_to_vmem [thread:$0]  %s452_s1, 2048, %s400_s12, [#allocation9], %s379_s0, %s379_s0, %s380_s3  }
  0x23   :  { %371 = dma.done.wait [#allocation6], 128  }
  0x24   :  { %372 = vsyncadd [#allocation6], 4294967168 }
  0x25   :  { %373 = dma.done.wait [#allocation9], 2048  }
  0x26   :  { %374 = vsyncadd [#allocation9], 4294965248  ;;  %v381_v0 = vmov 0.0|0.0   ;;  %v382_v1 = vmov 0.0   ;;  %vm383_vm0 = vmmov 0   ;;  %v46_v2 = vld [vmem:[#allocation8] sm:$0xff] }
  0x27   :  { %269 = vmatprep.subr.bf16.mxu0 %v381_v0  ;;  %44 = vst [vmem:[#allocation4] sm:$0x1] %v382_v1  ;;  %266 = vmatprep.mubr.msk.f32.mxu0 %vm383_vm0, %v382_v1  ;;  %v47_v3 = vld [vmem:[#allocation8 + $0x8] sm:$0xff]  ;;  %v48_v4 = vld [vmem:[#allocation8 + $0x10] sm:$0xff]  ;;  %v136_v6 = vmul.f32 %v46_v2, %v46_v2  ;;  %v49_v8 = vld [vmem:[#allocation8 + $0x18] sm:$0xff]  ;;  %s384_s1 = smov [#allocation10]  }
  0x28   :  { %v270_v5 = vpack.c.bf16 %v47_v3, %v46_v2  ;;  %v137_v7 = vmul.f32 %v47_v3, %v47_v3  ;;  %v138_v9 = vmul.f32 %v48_v4, %v48_v4  ;;  %v273_v11 = vpack.c.bf16 %v49_v8, %v48_v4  ;;  %v50_v13 = vld [vmem:[#allocation8 + $0x20] sm:$0xff]  ;;  %v51_v14 = vld [vmem:[#allocation8 + $0x28] sm:$0xff]  ;;  %v45_v17 = vld [vmem:[#allocation5] sm:$0xff]  ;;  %s207_s6 = sshll.u32 %s384_s1, 4  ;;  %s208_s6 = int_to_ptr.vmem [resolvable:$true] %s207_s6 }
  0x29   :  { %v139_v12 = vmul.f32 %v49_v8, %v49_v8  ;;  %v140_v16 = vmul.f32 %v50_v13, %v50_v13  ;;  %v276_v19 = vpack.c.bf16 %v51_v14, %v50_v13  ;;  %v141_v20 = vmul.f32 %v51_v14, %v51_v14  ;;  %v52_v22 = vld [vmem:[#allocation8 + $0x30] sm:$0xff]  ;;  %v53_v23 = vld [vmem:[#allocation8 + $0x38] sm:$0xff]  ;;  %v54_v29 = vld [vmem:[#allocation8 + $0x40] sm:$0xff]  ;;  %s349_s7 = scalar_lea.vmem %s208_s6, 128  ;;  %p354_p3 = scmp.lt.s32.totalorder %s208_s6, %s208_s6 }
  0x2a   :  { %271 = vmatpush3.bf16.msra.mxu0 %v270_v5  ;;  %v156_v10 = vadd.f32 %v137_v7, %v136_v6  ;;  %v135_v21 = vmul.f32 %v45_v17, %v45_v17  ;;  %v142_v25 = vmul.f32 %v52_v22, %v52_v22  ;;  %v279_v27 = vpack.c.bf16 %v53_v23, %v52_v22  ;;  %v55_v30 = vld [vmem:[#allocation8 + $0x48] sm:$0xff]  ;;  %v56_v36 = vld [vmem:[#allocation8 + $0x50] sm:$0xff]  ;;  %v57_v37 = vld [vmem:[#allocation8 + $0x58] sm:$0xff]  ;;  %p350_p2 = scmp.ne.s32.totalorder %s208_s6, %s349_s7  ;;  %p355_p4 = scmp.lt.s32.totalorder %s349_s7, %s349_s7 }
  0x2b   :  { %272 = vmatprep.subr.bf16.mxu0 %v381_v0  ;;  %v143_v28 = vmul.f32 %v53_v23, %v53_v23  ;;  %v144_v32 = vmul.f32 %v54_v29, %v54_v29  ;;  %v282_v34 = vpack.c.bf16 %v55_v30, %v54_v29  ;;  %v145_v35 = vmul.f32 %v55_v30, %v55_v30  ;;  %v58_v43 = vld [vmem:[#allocation8 + $0x60] sm:$0xff]  ;;  %v59_v44 = vld [vmem:[#allocation8 + $0x68] sm:$0xff]  ;;  %v60_v50 = vld [vmem:[#allocation8 + $0x70] sm:$0xff] }
  0x2c   :  { %v157_v15 = vadd.f32 %v156_v10, %v138_v9  ;;  %183 = vadd.xlane.f32.xlu0 %v135_v21  ;;  %v146_v39 = vmul.f32 %v56_v36, %v56_v36  ;;  %v285_v41 = vpack.c.bf16 %v57_v37, %v56_v36  ;;  %v147_v42 = vmul.f32 %v57_v37, %v57_v37  ;;  %v61_v51 = vld [vmem:[#allocation8 + $0x78] sm:$0xff]  ;;  %p356_p5 = por %p355_p4, %p354_p3 }
  0x2d   :  { %v148_v46 = vmul.f32 %v58_v43, %v58_v43  ;;  %v288_v48 = vpack.c.bf16 %v59_v44, %v58_v43  ;;  %v149_v49 = vmul.f32 %v59_v44, %v59_v44  ;;  %v150_v53 = vmul.f32 %v60_v50, %v60_v50 }
  0x2e   :  { %274 = vmatpush3.bf16.msra.mxu0 %v273_v11  ;;  %v158_v18 = vadd.f32 %v157_v15, %v139_v12  ;;  %v291_v55 = vpack.c.bf16 %v61_v51, %v60_v50  ;;  %v151_v56 = vmul.f32 %v61_v51, %v61_v51  ;;  %v155_v1 = vld [vmem:[#allocation4] sm:$0x1]  ;;  %p357_p6 = pnand %p356_p5, %p350_p2 }
  0x2f   :  { %275 = vmatprep.subr.bf16.mxu0 %v381_v0 }
  0x30   :  { %v159_v24 = vadd.f32 %v158_v18, %v140_v16 }
  0x32   :  { %277 = vmatpush3.bf16.msra.mxu0 %v276_v19  ;;  %v160_v26 = vadd.f32 %v159_v24, %v141_v20 }
  0x33   :  { %278 = vmatprep.subr.bf16.mxu0 %v381_v0 }
  0x34   :  { %v161_v31 = vadd.f32 %v160_v26, %v142_v25 }
  0x36   :  { %280 = vmatpush3.bf16.msra.mxu0 %v279_v27  ;;  %v162_v33 = vadd.f32 %v161_v31, %v143_v28 }
  0x37   :  { %281 = vmatprep.subr.bf16.mxu0 %v381_v0 }
  0x38   :  { %v163_v38 = vadd.f32 %v162_v33, %v144_v32 }
  0x3a   :  { %283 = vmatpush3.bf16.msra.mxu0 %v282_v34  ;;  %v164_v40 = vadd.f32 %v163_v38, %v145_v35 }
  0x3b   :  { %284 = vmatprep.subr.bf16.mxu0 %v381_v0 }
  0x3c   :  { %v165_v45 = vadd.f32 %v164_v40, %v146_v39 }
  0x3e   :  { %286 = vmatpush3.bf16.msra.mxu0 %v285_v41  ;;  %v166_v47 = vadd.f32 %v165_v45, %v147_v42 }
  0x3f   :  { %287 = vmatprep.subr.bf16.mxu0 %v381_v0 }
  0x40   :  { %v167_v52 = vadd.f32 %v166_v47, %v148_v46 }
  0x42   :  { %289 = vmatpush3.bf16.msra.mxu0 %v288_v48  ;;  %v168_v54 = vadd.f32 %v167_v52, %v149_v49 }
  0x43   :  { %290 = vmatprep.subr.bf16.mxu0 %v381_v0  ;;  %v194_v0 = vlaneseq }
  0x44   :  { %v169_v57 = vadd.f32 %v168_v54, %v150_v53 }
  0x45   :  { %v195_v8 = vshrl.u32 %v194_v0, 7 }
  0x46   :  { %292 = vmatpush3.bf16.msra.mxu0 %v291_v55  ;;  %v170_v58 = vadd.f32 %v169_v57, %v151_v56 }
  0x47   :  { %v196_v10 = vsub.s32 0, %v195_v8 }
  0x48   :  { %v171_v59 = vrot.slane %v170_v58, 4 }
  0x49   :  { %267 = vmatmul.mubr.f32.vlgmr.msra.gmra.mrb[0].mxu0 %v45_v17 }
  0x4a   :  { %v172_v60 = vadd.f32 %v171_v59, %v170_v58 }
  0x4c   :  { %v173_v61 = vrot.slane %v172_v60, 2 }
  0x4e   :  { %v174_v62 = vadd.f32 %v173_v61, %v172_v60 }
  0x50   :  { %v175_v63 = vrot.slane %v174_v62, 1 }
  0x52   :  { %v176_v2 = vadd.f32 %v175_v63, %v174_v62 }
  0x54   :  { %v177_v3 = vadd.f32 %v176_v2, %v155_v1 }
  0x56   :  { %178 = vst [vmem:[#allocation4] sm:$0x1] %v177_v3 }
  0x5d   :  { %v188_v5 = vld [vmem:[#allocation4] sm:$0x1] }
  0x5e   :  { %v189_v7 = vmax.f32 %v188_v5, 1e-24 }
  0xb9   :  { %v184_v4 = vpop.xlane.xlu0 %183 }
  0xba   :  { %v185_v6 = vmax.f32 %v184_v4, 1e-24 }
  0xbc   :  { %301 = vrsqrt.f32 %v185_v6 }
  0xbd   :  { %303 = vrsqrt.f32 %v189_v7 }
  0xc6   :  { %v302_v9 = vpop.eup %301 }
  0xc7   :  { %v304_v11 = vpop.eup %303  ;;  %v187_v12 = vmul.f32 10.0, %v302_v9 }
  0xc8   :  { %v197_v13 = vrot.slane %v304_v11, %v196_v10 }
 0x11c   :  { %v129_v14 = vpop.f32.mrb[0].mxu0 }
 0x11d   :  { %v192_v15 = vmul.f32 %v187_v12, %v129_v14  ;;  %v268_v16 = vpop.f32.mrb[1].mxu0 }
 0x11f   :  { %v199_v17 = vmul.f32 %v197_v13, %v192_v15 }
 0x121   :  { %200 = vst [vmem:[#allocation10] sm:$0xff] %v199_v17 }
 0x122   :  { %360 = shalt.err (!%p357_p6)
}
 0x123   :  { %s361_s10 = scalar_lea.hbm %s453_s2, 128 }
 0x124   :  { %p362_p7 = scmp.ne.s32.totalorder %s453_s2, %s361_s10  ;;  %p365_p8 = scmp.lt.u32.totalorder %s361_s10, %s453_s2 }
 0x126   :  { %p367_p9 = pnand %p365_p8, %p362_p7 }
 0x128   :  { %370 = shalt.err (!%p367_p9)
}
 0x129   :  { %210 = dma.vmem_to_hbm [thread:$0]  %s208_s6, 128, %s453_s2, [#allocation7]  }
 0x12a   :  { %375 = dma.done.wait [#allocation7], 128  }
 0x12b   :  { %376 = vsyncadd [#allocation7], 4294967168 }
 0x12c   :  { %214 = vsyncpa [#allocation6], 1 }
 0x12d   :  { %215 = vsyncpa [#allocation9], 1 }
 0x12e   :  { %216 = vsyncpa [#allocation7], 1 }

</bundles_post_ra>
